<compile_context>
chip_gen: v6e
topology: v6e:2x2x1
jax: 0.10.0
libtpu: 0.0.40
codegen_flags: <defaults>
</compile_context>

<pallas_src>
import functools

import jax
import jax.numpy as jnp
from jax.experimental import pallas as pl
from jax.experimental.pallas import tpu as pltpu

GAMMA = 2.0  # module default


def _round_up(x, m):
    return ((x + m - 1) // m) * m


def _vmem_capacity_bytes():
    try:
        cap = getattr(pltpu.get_tpu_info(), "vmem_capacity_bytes", None)
        if isinstance(cap, int) and cap > 0:
            return cap
    except Exception:
        pass
    return 64 << 20  # v7x per-TensorCore physical VMEM: safe lower bound


def _num_tensorcores():
    try:
        info = pltpu.get_tpu_info()
        for name in ("num_cores", "core_count", "num_tensorcores", "tensorcore_count"):
            v = getattr(info, name, None)
            if isinstance(v, int) and v > 0:
                return v
    except Exception:
        pass
    return 1  # v5e / v6e: one TensorCore per chip


def focal_loss_kernel(x_ref, t_ref, at_ref, o_ref, *, n_rows, blocks_per_core, gamma):
    # x_ref : (BN, C)  logits tile (native dtype) in VMEM
    # t_ref : (BN, 1)  int32 targets tile in VMEM
    # at_ref: (BN, 1)  f32 alpha[targets] tile in VMEM (gathered in the wrapper)
    # o_ref : (8, 128) f32 per-core partial-sum slab in VMEM (accumulator)
    ci = pl.program_id(0)  # core / partial-sum slot ("parallel")
    cj = pl.program_id(1)  # row-block step within this core ("arbitrary")

    @pl.when(cj == 0)
    def _():
        o_ref[...] = jnp.zeros_like(o_ref)

    x = x_ref[...].astype(jnp.float32)          # compute in f32 (v5e has no bf16 VPU/EUP)
    t = t_ref[...]                              # (BN, 1) int32
    alpha_t = at_ref[...].astype(jnp.float32)   # (BN, 1)

    bn, c = x.shape
    col = jax.lax.broadcasted_iota(jnp.int32, (bn, c), 1)
    is_target = col == t                        # one True per valid row
    # NOTE: out-of-range targets (t < 0 or t >= C) give an all-False row and thus a
    # zero loss contribution instead of an error (PyTorch's gather would raise).

    # Masked log-softmax: only the target column's log-prob is needed.
    m = jnp.max(x, axis=1, keepdims=True)                               # (BN, 1)
    s = jnp.sum(jnp.exp(x - m), axis=1, keepdims=True)                  # (BN, 1)
    x_t = jnp.sum(jnp.where(is_target, x, 0.0), axis=1, keepdims=True)  # x[i, t_i]

    log_p = (x_t - m) - jnp.log(s)              # <= 0, numerically stable
    probs = jnp.exp(log_p)
    om = 1.0 - probs
    if gamma == 2.0:
        focal = om * om                         # VPU multiplies; EUP only does exp/log
    elif gamma == 1.0:
        focal = om
    else:
        focal = jnp.power(om, jnp.float32(gamma))

    batch_loss = -alpha_t * focal * log_p       # (BN, 1)

    # Mask rows past the batch end (partial last tile / phantom blocks of the last
    # core). Keep this a select, not a multiply, so padding NaN/Inf cannot leak.
    gb = ci * blocks_per_core + cj
    row = gb * bn + jax.lax.broadcasted_iota(jnp.int32, (bn, 1), 0)
    batch_loss = jnp.where(row < n_rows, batch_loss, 0.0)

    # Accumulate this core's partial sum, splatted across its (8, 128) output slab
    # (keeps the output block layout-legal for any num_cores).
    o_ref[...] += jnp.sum(batch_loss)


def focal_loss(inputs, targets, alpha, gamma=GAMMA, block_n=None, num_cores=None):
    """Focal loss (mean over batch, size_average=True).

    inputs : (N, C) float logits. Prefer bf16 at the call site: the kernel is
             HBM-bound and upcasts to f32 internally (v5e-safe).
    targets: (N,) integer class ids.
    alpha  : (C,) or (C, 1) per-class weights.
    """
    N, C = inputs.shape
    itemsize = jnp.dtype(inputs.dtype).itemsize
    sublane = max(32 // itemsize, 8)          # 8 f32 / 16 bf16 / 32 int8-fp8
    padded_c = _round_up(C, 128)

    # ---- tile sizing: the primary lever, this kernel is HBM/DMA-bound -----------
    vmem_cap = _vmem_capacity_bytes()
    vmem_limit = min(vmem_cap // 2, 48 << 20)           # ~32 MiB v7x, 48 MiB v5e/v6e
    io_budget = (vmem_limit * 2) // 3
    if block_n is None:
        # Per-row VMEM cost: double-buffered logits + targets + alpha_t tiles, plus
        # an allowance of ~8 lane-padded (block_n, 1) f32 temporaries that may spill.
        per_row = 2 * padded_c * itemsize + 2 * 2 * 128 * 4 + 8 * 128 * 4
        bn = min(io_budget // per_row, (4 << 20) // max(C * itemsize, 1))
        block_n = max((int(bn) // sublane) * sublane, sublane)
    if block_n >= N:
        block_n = N                                     # single full-batch block
    nblocks = -(-N // block_n)

    if num_cores is None:
        num_cores = _num_tensorcores()
    num_cores = max(1, min(int(num_cores), nblocks))
    steps = -(-nblocks // num_cores)

    used = 2 * block_n * padded_c * itemsize + 12 * block_n * 128 * 4 + (2 << 20)
    vmem_limit = int(min(max(vmem_limit, used), vmem_cap))

    # ---- wrapper-side prep -------------------------------------------------------
    t2d = targets.reshape(N, 1).astype(jnp.int32)
    a1d = jnp.reshape(alpha, (-1,)).astype(jnp.float32)
    at2d = a1d[targets.astype(jnp.int32)].reshape(N, 1)  # alpha[targets] hoisted out

    def row_block(i, j):
        # Clamp phantom blocks of the last core; their rows are masked in-kernel.
        return jnp.minimum(i * steps + j, nblocks - 1)

    kernel = functools.partial(
        focal_loss_kernel, n_rows=N, blocks_per_core=steps, gamma=float(gamma)
    )

    cost = pl.CostEstimate(
        flops=int(6 * N * C),
        transcendentals=int(N * C + 3 * N),
        bytes_accessed=int(N * C * itemsize + 8 * N + num_cores * 8 * 128 * 4),
    )

    out = pl.pallas_call(
        kernel,
        out_shape=jax.ShapeDtypeStruct((num_cores * 8, 128), jnp.float32),
        grid=(num_cores, steps),
        in_specs=[
            pl.BlockSpec((block_n, C), lambda i, j: (row_block(i, j), 0)),
            pl.BlockSpec((block_n, 1), lambda i, j: (row_block(i, j), 0)),
            pl.BlockSpec((block_n, 1), lambda i, j: (row_block(i, j), 0)),
        ],
        out_specs=pl.BlockSpec((8, 128), lambda i, j: (i, 0)),
        compiler_params=pltpu.CompilerParams(
            dimension_semantics=("parallel", "arbitrary"),
            vmem_limit_bytes=vmem_limit,
        ),
        cost_estimate=cost,
    )(inputs, t2d, at2d)

    # Every element of core i's (8, 128) slab holds its partial sum; take one each.
    partials = out.reshape(num_cores, 8 * 128)[:, 0]
    return jnp.sum(partials) * jnp.float32(1.0 / N)      # size_average=True -> mean


def focal_loss_ref(inputs, targets, alpha, gamma=GAMMA):
    # pure-JAX reference for sanity checking
    x = inputs.astype(jnp.float32)
    p = jax.nn.softmax(x, axis=1)
    probs = jnp.take_along_axis(p, targets[:, None], axis=1)      # (N, 1)
    a = jnp.reshape(alpha, (-1,)).astype(jnp.float32)[targets][:, None]
    batch_loss = -a * (1.0 - probs) ** gamma * jnp.log(probs)
    return jnp.mean(batch_loss)


if __name__ == "__main__":
    key = jax.random.PRNGKey(0)
    k1, k2 = jax.random.split(key)

    N, C = 8, 16  # small batch, class_num=16 (matches the module's (N, C) layout)
    inputs = jax.random.normal(k1, (N, C), dtype=jnp.float32)
    targets = jax.random.randint(k2, (N,), 0, C, dtype=jnp.int32)
    alpha = jnp.ones((C,), dtype=jnp.float32)  # module default torch.ones(class_num, 1)

    loss = focal_loss(inputs, targets, alpha)
    loss = jax.block_until_ready(loss)

    ref = focal_loss_ref(inputs, targets, alpha)
    assert jnp.allclose(loss, ref, rtol=1e-5, atol=1e-6), (loss, ref)

    print("KERNEL_OK")
</pallas_src>

<mosaic_0001>
module attributes {stable_mosaic.version = 11 : i64} {
  func.func @focal_loss_kernel(%arg0: i32, %arg1: i32, %arg2: memref<8x16xf32, #tpu.memory_space<vmem>>, %arg3: memref<8x1xi32, #tpu.memory_space<vmem>>, %arg4: memref<8x1xf32, #tpu.memory_space<vmem>>, %arg5: memref<8x128xf32, #tpu.memory_space<vmem>>) attributes {dimension_semantics = [#tpu.dimension_semantics<parallel>, #tpu.dimension_semantics<arbitrary>], iteration_bounds = array<i64: 1, 1>, scalar_prefetch = 0 : i64, scratch_operands = 0 : i64, tpu.core_type = #tpu.core_type<tc>, window_params = [{transform_indices = @transform_0, window_bounds = array<i64: 8, 16>}, {transform_indices = @transform_1, window_bounds = array<i64: 8, 1>}, {transform_indices = @transform_2, window_bounds = array<i64: 8, 1>}, {transform_indices = @transform_3, window_bounds = array<i64: 8, 128>}]} {
    %c0_i32 = arith.constant 0 : i32
    %0 = arith.cmpi eq, %arg1, %c0_i32 : i32
    %1 = arith.extui %0 : i1 to i32
    %c0_i32_0 = arith.constant 0 : i32
    %2 = arith.cmpi ne, %1, %c0_i32_0 : i32
    scf.if %2 {
      %cst_18 = arith.constant 0.000000e+00 : f32
      %49 = vector.broadcast %cst_18 : f32 to vector<8x128xf32>
      %c0_19 = arith.constant 0 : index
      %c0_20 = arith.constant 0 : index
      %50 = vector.load %arg5[%c0_19, %c0_20] : memref<8x128xf32, #tpu.memory_space<vmem>>, vector<8x128xf32>
      tpu.vector_store %arg5[%c0_19, %c0_20], %49 {strides = array<i32>} : memref<8x128xf32, #tpu.memory_space<vmem>>, vector<8x128xf32>,
    } else {
    }
    %c0 = arith.constant 0 : index
    %c0_1 = arith.constant 0 : index
    %3 = vector.load %arg2[%c0, %c0_1] : memref<8x16xf32, #tpu.memory_space<vmem>>, vector<8x16xf32>
    %c0_2 = arith.constant 0 : index
    %c0_3 = arith.constant 0 : index
    %4 = vector.load %arg3[%c0_2, %c0_3] : memref<8x1xi32, #tpu.memory_space<vmem>>, vector<8x1xi32>
    %c0_4 = arith.constant 0 : index
    %c0_5 = arith.constant 0 : index
    %5 = vector.load %arg4[%c0_4, %c0_5] : memref<8x1xf32, #tpu.memory_space<vmem>>, vector<8x1xf32>
    %6 = tpu.iota {dimensions = array<i32: 1>} : vector<8x16xi32>
    %7 = vector.broadcast %4 : vector<8x1xi32> to vector<8x16xi32>
    %8 = arith.cmpi eq, %6, %7 : vector<8x16xi32>
    %cst = arith.constant dense<0xFF800000> : vector<8xf32>
    %9 = vector.multi_reduction <maximumf>, %3, %cst [1] : vector<8x16xf32> to vector<8xf32>
    %10 = vector.shape_cast %9 : vector<8xf32> to vector<8x1xf32>
    %11 = vector.broadcast %10 : vector<8x1xf32> to vector<8x16xf32>
    %12 = arith.subf %3, %11 : vector<8x16xf32>
    %13 = math.exp %12 : vector<8x16xf32>
    %cst_6 = arith.constant dense<0.000000e+00> : vector<8xf32>
    %14 = vector.multi_reduction <add>, %13, %cst_6 [1] : vector<8x16xf32> to vector<8xf32>
    %15 = vector.shape_cast %14 : vector<8xf32> to vector<8x1xf32>
    %cst_7 = arith.constant 0.000000e+00 : f32
    %16 = vector.broadcast %cst_7 : f32 to vector<8x16xf32>
    %17 = arith.select %8, %3, %16 : vector<8x16xi1>, vector<8x16xf32>
    %cst_8 = arith.constant dense<0.000000e+00> : vector<8xf32>
    %18 = vector.multi_reduction <add>, %17, %cst_8 [1] : vector<8x16xf32> to vector<8xf32>
    %19 = vector.shape_cast %18 : vector<8xf32> to vector<8x1xf32>
    %20 = arith.subf %19, %10 : vector<8x1xf32>
    %21 = math.log %15 : vector<8x1xf32>
    %22 = arith.subf %20, %21 : vector<8x1xf32>
    %23 = math.exp %22 : vector<8x1xf32>
    %cst_9 = arith.constant 1.000000e+00 : f32
    %24 = vector.broadcast %cst_9 : f32 to vector<8x1xf32>
    %25 = arith.subf %24, %23 : vector<8x1xf32>
    %26 = arith.mulf %25, %25 : vector<8x1xf32>
    %cst_10 = arith.constant 0.000000e+00 : f32
    %27 = vector.broadcast %cst_10 : f32 to vector<8x1xf32>
    %28 = arith.subf %27, %5 : vector<8x1xf32>
    %29 = arith.mulf %28, %26 : vector<8x1xf32>
    %30 = arith.mulf %29, %22 : vector<8x1xf32>
    %c1_i32 = arith.constant 1 : i32
    %31 = arith.muli %arg0, %c1_i32 : i32
    %32 = arith.addi %31, %arg1 : i32
    %c8_i32 = arith.constant 8 : i32
    %33 = arith.muli %32, %c8_i32 : i32
    %34 = tpu.iota {dimensions = array<i32: 0>} : vector<8x1xi32>
    %35 = vector.broadcast %33 : i32 to vector<8x1xi32>
    %36 = arith.addi %35, %34 : vector<8x1xi32>
    %c8_i32_11 = arith.constant 8 : i32
    %37 = vector.broadcast %c8_i32_11 : i32 to vector<8x1xi32>
    %38 = arith.cmpi slt, %36, %37 : vector<8x1xi32>
    %cst_12 = arith.constant 0.000000e+00 : f32
    %39 = vector.broadcast %cst_12 : f32 to vector<8x1xf32>
    %40 = arith.select %38, %30, %39 : vector<8x1xi1>, vector<8x1xf32>
    %c0_13 = arith.constant 0 : index
    %c0_14 = arith.constant 0 : index
    %41 = vector.load %arg5[%c0_13, %c0_14] : memref<8x128xf32, #tpu.memory_space<vmem>>, vector<8x128xf32>
    %42 = vector.shape_cast %40 : vector<8x1xf32> to vector<1x8x1xf32>
    %cst_15 = arith.constant dense<0.000000e+00> : vector<1xf32>
    %43 = vector.multi_reduction <add>, %42, %cst_15 [1, 2] : vector<1x8x1xf32> to vector<1xf32>
    %44 = vector.shape_cast %43 : vector<1xf32> to vector<1x1x1xf32>
    %45 = vector.extract %44[0, 0, 0] : f32 from vector<1x1x1xf32>
    %46 = vector.broadcast %45 : f32 to vector<8x128xf32>
    %47 = arith.addf %41, %46 : vector<8x128xf32>
    %c0_16 = arith.constant 0 : index
    %c0_17 = arith.constant 0 : index
    %48 = vector.load %arg5[%c0_16, %c0_17] : memref<8x128xf32, #tpu.memory_space<vmem>>, vector<8x128xf32>
    tpu.vector_store %arg5[%c0_16, %c0_17], %47 {strides = array<i32>} : memref<8x128xf32, #tpu.memory_space<vmem>>, vector<8x128xf32>,
    return
  }
  func.func @transform_0(%arg0: i32, %arg1: i32) -> (i32, i32) {
    %c1_i32 = arith.constant 1 : i32
    %0 = arith.muli %arg0, %c1_i32 : i32
    %1 = arith.addi %0, %arg1 : i32
    %c0_i32 = arith.constant 0 : i32
    %2 = arith.minsi %1, %c0_i32 : i32
    %c0_i32_0 = arith.constant 0 : i32
    %c0_i32_1 = arith.constant 0 : i32
    return %2, %c0_i32_0 : i32, i32
  }
  func.func @transform_1(%arg0: i32, %arg1: i32) -> (i32, i32) {
    %c1_i32 = arith.constant 1 : i32
    %0 = arith.muli %arg0, %c1_i32 : i32
    %1 = arith.addi %0, %arg1 : i32
    %c0_i32 = arith.constant 0 : i32
    %2 = arith.minsi %1, %c0_i32 : i32
    %c0_i32_0 = arith.constant 0 : i32
    %c0_i32_1 = arith.constant 0 : i32
    return %2, %c0_i32_0 : i32, i32
  }
  func.func @transform_2(%arg0: i32, %arg1: i32) -> (i32, i32) {
    %c1_i32 = arith.constant 1 : i32
    %0 = arith.muli %arg0, %c1_i32 : i32
    %1 = arith.addi %0, %arg1 : i32
    %c0_i32 = arith.constant 0 : i32
    %2 = arith.minsi %1, %c0_i32 : i32
    %c0_i32_0 = arith.constant 0 : i32
    %c0_i32_1 = arith.constant 0 : i32
    return %2, %c0_i32_0 : i32, i32
  }
  func.func @transform_3(%arg0: i32, %arg1: i32) -> (i32, i32) {
    %c0_i32 = arith.constant 0 : i32
    %c0_i32_0 = arith.constant 0 : i32
    return %arg0, %c0_i32 : i32, i32
  }
}

</mosaic_0001>

<bundles_post_ra>
// kernel: tpu_custom_call.1
= control target key start
LH: loop header
LB: loop body
LE: loop exit
PB: predicated region body
PF: predicated region fallthrough
CT: control target
= control target key end

     0   :  { %vm110_vm0 = vcmask 130048   ;;  %s261_s0 = inlined_call_operand.vmem [shape: f32[8,16], index: 0, kind: input, shape index: {}]   ;;  %s262_s1 = inlined_call_operand.vmem [shape: s32[8,1], index: 1, kind: input, shape index: {}]   ;;  %s263_s2 = inlined_call_operand.vmem [shape: f32[8,1], index: 2, kind: input, shape index: {}]   ;;  %s264_s3 = inlined_call_operand.hbm [shape: f32[8,128], index: 3, kind: output, shape index: {}]  }
   0x1   :  { %v101_v0 = vld [vmem:[%s261_s0] sm:$0xff] }
   0x2   :  { %8 = vsyncpa [#allocation3], 0  ;;  %v111_v1 = vsel %vm110_vm0, %v101_v0, -inf  ;;  %v224_v2 = vmov 0   ;;  %v102_v3 = vld [vmem:[%s262_s1] sm:$0xff]  ;;  %v104_v7 = vlaneseq  ;;  %vm144_vm2 = vcmask 7168  }
   0x3   :  { %195 = vset.pattern.permute.xlu0 %v224_v2  ;;  %v103_v21 = vld [vmem:[%s263_s2] sm:$0xff]  ;;  %s225_s16 = smov [#allocation2]  }
   0x4   :  { %112 = vmax.xlane.f32.xlu0 %v111_v1  ;;  %v105_v8 = vand.u32 127, %v104_v7  ;;  %v132_v24 = vsub.f32 0.0, %v103_v21  ;;  %s164_s17 = sshll.u32 %s225_s16, 4  ;;  %s165_s17 = int_to_ptr.vmem [resolvable:$true] %s164_s17 }
   0x5   :  { %s202_s18 = scalar_lea.vmem %s165_s17, 128  ;;  %p207_p1 = scmp.lt.s32.totalorder %s165_s17, %s165_s17 }
   0x6   :  { %p203_p0 = scmp.ne.s32.totalorder %s165_s17, %s202_s18  ;;  %p208_p2 = scmp.lt.s32.totalorder %s202_s18, %s202_s18 }
   0x8   :  { %p209_p3 = por %p208_p2, %p207_p1 }
   0xa   :  { %p210_p4 = pnand %p209_p3, %p203_p0 }
  0x1a   :  { %107 = vperm.xlu0 %195, %v102_v3  }
  0x8d   :  { %v113_v4 = vpop.xlane.xlu0 %112 }
  0x8e   :  { %v114_v5 = vsub.f32 %v101_v0, %v113_v4 }
  0x90   :  { %v115_v6 = vmul.f32 1.442695, %v114_v5 }
  0x92   :  { %196 = vpow2.f32 %v115_v6 }
  0x95   :  { %v108_v9 = vpop.permute.xlu0 %107 }
  0x96   :  { %vm109_vm1 = vcmp.eq.s32.totalorder %v105_v8, %v108_v9 }
  0x97   :  { %v120_v11 = vsel %vm109_vm1, %v101_v0, 0.0 }
  0x98   :  { %v121_v13 = vsel %vm110_vm0, %v120_v11, 0.0 }
  0x9f   :  { %v197_v10 = vpop.eup %196 }
  0xa0   :  { %v117_v12 = vsel %vm110_vm0, %v197_v10, 0.0 }
  0xa1   :  { %118 = vadd.xlane.f32.xlu1 %v117_v12 }
  0xa5   :  { %122 = vadd.xlane.f32.xlu1 %v121_v13 }
 0x12a   :  { %v119_v14 = vpop.xlane.xlu1 %118 }
 0x12b   :  { %198 = vlog2.f32 %v119_v14 }
 0x12e   :  { %v123_v15 = vpop.xlane.xlu1 %122 }
 0x12f   :  { %v124_v18 = vsub.f32 %v123_v15, %v113_v4 }
 0x138   :  { %v199_v16 = vpop.eup %198 }
 0x139   :  { %v126_v17 = vmul.f32 0.6931472, %v199_v16 }
 0x13b   :  { %v127_v19 = vsub.f32 %v124_v18, %v126_v17 }
 0x13d   :  { %v128_v20 = vmul.f32 1.442695, %v127_v19 }
 0x13f   :  { %200 = vpow2.f32 %v128_v20 }
 0x14c   :  { %v201_v22 = vpop.eup %200 }
 0x14d   :  { %v130_v23 = vsub.f32 1.0, %v201_v22 }
 0x14f   :  { %v131_v25 = vmul.f32 %v130_v23, %v130_v23 }
 0x151   :  { %v133_v26 = vmul.f32 %v132_v24, %v131_v25 }
 0x153   :  { %v134_v27 = vmul.f32 %v133_v26, %v127_v19 }
 0x155   :  { %v145_v28 = vsel %vm144_vm2, %v134_v27, 0.0 }
 0x156   :  { %146 = vadd.xlane.f32.xlu1 %v145_v28 }
 0x1df   :  { %v147_v29 = vpop.xlane.xlu1 %146 }
 0x1e0   :  { %v148_v30 = vrot.slane %v147_v29, 4 }
 0x1e2   :  { %v149_v31 = vadd.f32 %v148_v30, %v147_v29 }
 0x1e4   :  { %v150_v32 = vrot.slane %v149_v31, 2 }
 0x1e6   :  { %v151_v33 = vadd.f32 %v150_v32, %v149_v31 }
 0x1e8   :  { %v152_v34 = vrot.slane %v151_v33, 1 }
 0x1ea   :  { %v153_v35 = vadd.f32 %v152_v34, %v151_v33 }
 0x1ec   :  { %190 = vpush %v153_v35 }
 0x21d   :  { %s191_s2 = spop %190 }
 0x21e   :  { %v155_v36 = vstv %s191_s2 }
 0x21f   :  { %157 = vst [vmem:[#allocation2] sm:$0xff] %v155_v36 }
 0x220   :  { %213 = shalt.err (!%p210_p4)
}
 0x221   :  { %167 = dma.vmem_to_hbm [thread:$0]  %s165_s17, 128, %s264_s3, [#allocation3]  }
 0x222   :  { %222 = dma.done.wait [#allocation3], 128  }
 0x223   :  { %223 = vsyncadd [#allocation3], 4294967168 }
 0x224   :  { %171 = vsyncpa [#allocation3], 1 }

</bundles_post_ra>
